<compile_context>
chip_gen: v7x
topology: tpu7x:2x2x1
jax: 0.10.0
libtpu: 0.0.40
codegen_flags: <defaults>
</compile_context>

<pallas_src>
import functools

import numpy as np

import jax
import jax.numpy as jnp
from jax import lax
from jax.experimental import pallas as pl
from jax.experimental.pallas import tpu as pltpu


# ------------------------------ fused kernel --------------------------------

def _bottleneck_kernel(x_ref, w1_ref, b1_ref, s_ref, u_ref, b2_ref, w3_ref, b3_ref,
                       o_ref):
    # Layout: rows = (d, h), lanes = (w, channel).  All blocks are full-array blocks.
    x = x_ref[0]                                              # (D*H, W*Cin) f32

    # conv1 (1x1x1, W-block-diagonal weight) + bn1 + relu  -- one tall MXU matmul.
    y1 = jnp.dot(x.astype(jnp.bfloat16), w1_ref[...],
                 preferred_element_type=jnp.float32)
    y1 = jnp.maximum(y1 + b1_ref[...], 0.0)                   # (D*H, W*mid) f32

    # grouped 3x3x3 conv + bn2 + relu:   acc = sum_j  S_j @ y1 @ U_j
    #   S_j : (depth, height) shift + zero-pad mask on the row axis (0/1 matrix)
    #   U_j : width shift + zero-pad mask  (x)  per-group channel mixing, bn2-scaled
    # This keeps conv2 on the MXU in f32 with no in-kernel padding, slicing or reshapes.
    acc = jnp.zeros_like(y1)
    for j in range(9):
        t = jnp.dot(y1, u_ref[j], preferred_element_type=jnp.float32)
        acc = acc + jnp.dot(s_ref[j], t, preferred_element_type=jnp.float32)
    y2 = jnp.maximum(acc + b2_ref[...], 0.0)                  # (D*H, W*mid) f32

    # conv3 (1x1x1, W-block-diagonal) + bn3 + residual add + relu.
    y3 = jnp.dot(y2.astype(jnp.bfloat16), w3_ref[...],
                 preferred_element_type=jnp.float32)          # (D*H, W*Cout) f32
    o_ref[0] = jnp.maximum(y3 + b3_ref[...] + x, 0.0).astype(o_ref.dtype)


# ------------------------------ glue helpers --------------------------------

def _bn_fold(gamma, beta, mean, var, eps=1e-5):
    scale = gamma / jnp.sqrt(var + eps)
    return scale, beta - mean * scale


def _row_shift_mats(D, H):
    """S[kd*3+kh] (D*H, D*H): S @ M pulls row (d+kd-1, h+kh-1), zero at boundaries."""
    DH = D * H
    S = np.zeros((9, DH, DH), np.float32)
    for kd in range(3):
        for kh in range(3):
            j = kd * 3 + kh
            for d in range(D):
                for h in range(H):
                    dd, hh = d + kd - 1, h + kh - 1
                    if 0 <= dd < D and 0 <= hh < H:
                        S[j, d * H + h, dd * H + hh] = 1.0
    return S


def _w_shift_mats(W):
    """WS[kw] (W, W): right-multiplying pulls width (w+kw-1), zero at boundaries."""
    WS = np.zeros((3, W, W), np.float32)
    for kw in range(3):
        for wo in range(W):
            wi = wo + kw - 1
            if 0 <= wi < W:
                WS[kw, wi, wo] = 1.0
    return WS


# --------------------------- ResNeXtBottleneck ------------------------------

def resnext_bottleneck_forward(x, params, *, cardinality, stride=1):
    """Fused Pallas forward for ResNeXtBottleneck (attention=False, downsample=None)."""
    assert stride == 1, "identity residual path requires stride=1 (no downsample)"
    B, Cin, D, H, W = x.shape
    w1, w2, w3 = params["w1"], params["w2"], params["w3"]
    mid = w1.shape[0]
    Cout = w3.shape[0]
    G = cardinality
    assert mid % G == 0
    cin_g = mid // G
    out_g = mid // G
    assert w2.shape[:2] == (mid, cin_g)
    assert Cin == Cout, "identity residual path requires inplanes == planes * expansion"

    DH, WC, WM, WO = D * H, W * Cin, W * mid, W * Cout

    # ---- fold inference BatchNorms into per-channel scale/bias -----------------------
    s1, b1 = _bn_fold(*params["bn1"])
    s2, b2 = _bn_fold(*params["bn2"])
    s3, b3 = _bn_fold(*params["bn3"])

    # ---- conv1 / conv3: 1x1x1 convs as W-block-diagonal bf16 matmul weights ----------
    eye_w = jnp.eye(W, dtype=jnp.float32)
    w1f = w1[:, :, 0, 0, 0].T * s1[None, :]                    # (Cin, mid)  f32
    w3f = w3[:, :, 0, 0, 0].T * s3[None, :]                    # (mid, Cout) f32
    w1w = jnp.kron(eye_w, w1f).astype(jnp.bfloat16)            # (W*Cin, W*mid)
    w3w = jnp.kron(eye_w, w3f).astype(jnp.bfloat16)            # (W*mid, W*Cout)
    b1w = jnp.tile(b1.reshape(1, mid), (1, W)).astype(jnp.float32)    # (1, W*mid)
    b2w = jnp.tile(b2.reshape(1, mid), (1, W)).astype(jnp.float32)    # (1, W*mid)
    b3w = jnp.tile(b3.reshape(1, Cout), (1, W)).astype(jnp.float32)   # (1, W*Cout)

    # ---- grouped 3x3x3 conv operators:  conv2(y1) = sum_j S_j @ y1 @ U_j -------------
    # Ct[t, c_in, c_out]: per-tap group-block-diagonal channel mixing, bn2 scale folded.
    w2s = w2.reshape(mid, cin_g, 27) * s2[:, None, None]       # (c_out, c_in_local, tap)
    Ct = jnp.zeros((27, mid, mid), jnp.float32)
    for g in range(G):
        blk = w2s[g * out_g:(g + 1) * out_g]                   # (out_g, cin_g, 27)
        Ct = Ct.at[:, g * cin_g:(g + 1) * cin_g,
                   g * out_g:(g + 1) * out_g].set(jnp.transpose(blk, (2, 1, 0)))
    WS = _w_shift_mats(W)                                      # (3, W, W) 0/1 constants
    U9 = jnp.stack([
        sum(jnp.kron(jnp.asarray(WS[kw]), Ct[kd * 9 + kh * 3 + kw]) for kw in range(3))
        for kd in range(3) for kh in range(3)])                # (9, W*mid, W*mid) f32
    S9 = jnp.asarray(_row_shift_mats(D, H))                    # (9, D*H, D*H)     f32

    # ---- activations: channels-last, (d,h) rows x (w,c) lanes (lane-dense) -----------
    xw = jnp.transpose(x, (0, 2, 3, 4, 1)).reshape(B, DH, WC)  # f32; also the residual

    out = pl.pallas_call(
        _bottleneck_kernel,
        out_shape=jax.ShapeDtypeStruct((B, DH, WO), jnp.float32),
        grid=(B,),
        in_specs=[
            pl.BlockSpec((1, DH, WC), lambda b: (b, 0, 0)),    # x (conv1 input + residual)
            pl.BlockSpec((WC, WM), lambda b: (0, 0)),          # conv1 weight (bf16)
            pl.BlockSpec((1, WM), lambda b: (0, 0)),           # bn1 bias
            pl.BlockSpec((9, DH, DH), lambda b: (0, 0, 0)),    # row shift/mask matrices
            pl.BlockSpec((9, WM, WM), lambda b: (0, 0, 0)),    # conv2 lane-mix matrices
            pl.BlockSpec((1, WM), lambda b: (0, 0)),           # bn2 bias
            pl.BlockSpec((WM, WO), lambda b: (0, 0)),          # conv3 weight (bf16)
            pl.BlockSpec((1, WO), lambda b: (0, 0)),           # bn3 bias
        ],
        out_specs=pl.BlockSpec((1, DH, WO), lambda b: (b, 0, 0)),
        compiler_params=pltpu.CompilerParams(
            dimension_semantics=("parallel",)),                # one batch per TC on v7x
    )(xw, w1w, b1w, S9, U9, b2w, w3w, b3w)

    # TODO(synk): attention=True path (`sta` module) and the `downsample` branch are not
    # exercised by this configuration (defaults attention=False, downsample=None) and
    # are not implemented.
    out = out.reshape(B, D, H, W, Cout)
    return jnp.transpose(out, (0, 4, 1, 2, 3))


# ------------------------------- reference ----------------------------------

def _ref_forward(x, params, *, cardinality, stride=1):
    dn = ("NCDHW", "OIDHW", "NCDHW")

    def conv(inp, w, st, pad, groups):
        return lax.conv_general_dilated(
            inp, w, window_strides=(st,) * 3, padding=[(pad, pad)] * 3,
            dimension_numbers=dn, feature_group_count=groups,
            precision=lax.Precision.HIGHEST)

    def bn(inp, p):
        s, b = _bn_fold(*p)
        return inp * s[None, :, None, None, None] + b[None, :, None, None, None]

    out = jax.nn.relu(bn(conv(x, params["w1"], 1, 0, 1), params["bn1"]))
    out = jax.nn.relu(bn(conv(out, params["w2"], stride, 1, cardinality), params["bn2"]))
    out = bn(conv(out, params["w3"], 1, 0, 1), params["bn3"])
    return jax.nn.relu(out + x)


# --------------------------------- main --------------------------------------

if __name__ == "__main__":
    # ResNeXtBottleneck config (expansion = 2)
    inplanes, planes, cardinality, stride = 64, 32, 4, 1
    mid_planes = cardinality * int(planes / 32)           # = 4
    out_planes = planes * 2                               # = 64 (== inplanes)

    B, D, H, W = 2, 4, 8, 8
    key = jax.random.PRNGKey(0)
    ks = jax.random.split(key, 16)

    x = jax.random.normal(ks[0], (B, inplanes, D, H, W), jnp.float32)

    def bn_params(k, c):
        k1, k2, k3, k4 = jax.random.split(k, 4)
        gamma = jax.random.uniform(k1, (c,), jnp.float32, 0.5, 1.5)
        beta = 0.1 * jax.random.normal(k2, (c,), jnp.float32)
        mean = 0.1 * jax.random.normal(k3, (c,), jnp.float32)
        var = jax.random.uniform(k4, (c,), jnp.float32, 0.5, 1.5)
        return (gamma, beta, mean, var)

    params = {
        # PyTorch Conv3d weight layouts
        "w1": 0.1 * jax.random.normal(ks[1], (mid_planes, inplanes, 1, 1, 1), jnp.float32),
        "w2": 0.1 * jax.random.normal(
            ks[2], (mid_planes, mid_planes // cardinality, 3, 3, 3), jnp.float32),
        "w3": 0.1 * jax.random.normal(ks[3], (out_planes, mid_planes, 1, 1, 1), jnp.float32),
        "bn1": bn_params(ks[4], mid_planes),
        "bn2": bn_params(ks[5], mid_planes),
        "bn3": bn_params(ks[6], out_planes),
    }

    fwd = jax.jit(functools.partial(
        resnext_bottleneck_forward, cardinality=cardinality, stride=stride))
    out = jax.block_until_ready(fwd(x, params))

    ref = jax.block_until_ready(
        _ref_forward(x, params, cardinality=cardinality, stride=stride))

    assert out.shape == (B, out_planes, D, H, W)
    max_err = float(jnp.max(jnp.abs(out - ref)))
    # bf16 MXU matmuls (conv1/conv3) + f32 MXU grouped conv vs. f32 HIGHEST reference.
    assert jnp.allclose(out, ref, rtol=5e-3, atol=5e-3), max_err

    print("KERNEL_OK")
</pallas_src>

<mosaic_0001>
module attributes {stable_mosaic.version = 11 : i64} {
  func.func @_bottleneck_kernel(%arg0: i32, %arg1: memref<1x32x512xf32, #tpu.memory_space<vmem>>, %arg2: memref<512x32xbf16, #tpu.memory_space<vmem>>, %arg3: memref<1x32xf32, #tpu.memory_space<vmem>>, %arg4: memref<9x32x32xf32, #tpu.memory_space<vmem>>, %arg5: memref<9x32x32xf32, #tpu.memory_space<vmem>>, %arg6: memref<1x32xf32, #tpu.memory_space<vmem>>, %arg7: memref<32x512xbf16, #tpu.memory_space<vmem>>, %arg8: memref<1x512xf32, #tpu.memory_space<vmem>>, %arg9: memref<1x32x512xf32, #tpu.memory_space<vmem>>) attributes {dimension_semantics = [#tpu.dimension_semantics<parallel>], iteration_bounds = array<i64: 2>, scalar_prefetch = 0 : i64, scratch_operands = 0 : i64, tpu.core_type = #tpu.core_type<tc>, window_params = [{transform_indices = @transform_0, window_bounds = array<i64: 1, 32, 512>}, {pipeline_mode = #tpu.pipeline_mode<synchronous>, transform_indices = @transform_1, window_bounds = array<i64: 512, 32>}, {pipeline_mode = #tpu.pipeline_mode<synchronous>, transform_indices = @transform_2, window_bounds = array<i64: 1, 32>}, {pipeline_mode = #tpu.pipeline_mode<synchronous>, transform_indices = @transform_3, window_bounds = array<i64: 9, 32, 32>}, {pipeline_mode = #tpu.pipeline_mode<synchronous>, transform_indices = @transform_4, window_bounds = array<i64: 9, 32, 32>}, {pipeline_mode = #tpu.pipeline_mode<synchronous>, transform_indices = @transform_5, window_bounds = array<i64: 1, 32>}, {pipeline_mode = #tpu.pipeline_mode<synchronous>, transform_indices = @transform_6, window_bounds = array<i64: 32, 512>}, {pipeline_mode = #tpu.pipeline_mode<synchronous>, transform_indices = @transform_7, window_bounds = array<i64: 1, 512>}, {transform_indices = @transform_8, window_bounds = array<i64: 1, 32, 512>}]} {
    %c0 = arith.constant 0 : index
    %c0_0 = arith.constant 0 : index
    %c0_1 = arith.constant 0 : index
    %0 = vector.load %arg1[%c0, %c0_0, %c0_1] : memref<1x32x512xf32, #tpu.memory_space<vmem>>, vector<1x32x512xf32>
    %1 = vector.shape_cast %0 : vector<1x32x512xf32> to vector<32x512xf32>
    %2 = arith.truncf %1 : vector<32x512xf32> to vector<32x512xbf16>
    %c0_2 = arith.constant 0 : index
    %c0_3 = arith.constant 0 : index
    %3 = vector.load %arg2[%c0_2, %c0_3] : memref<512x32xbf16, #tpu.memory_space<vmem>>, vector<512x32xbf16>
    %cst = arith.constant dense<0.000000e+00> : vector<32x32xf32>
    %4 = tpu.matmul %2, %3, %cst {dimension_numbers = #tpu.dot_dimension_numbers<[1], [0], [0], [1], [0, 0, 1, 1], [], []>} : vector<32x512xbf16>, vector<512x32xbf16>, vector<32x32xf32> -> vector<32x32xf32>
    %c0_4 = arith.constant 0 : index
    %c0_5 = arith.constant 0 : index
    %5 = vector.load %arg3[%c0_4, %c0_5] : memref<1x32xf32, #tpu.memory_space<vmem>>, vector<1x32xf32>
    %6 = vector.broadcast %5 : vector<1x32xf32> to vector<32x32xf32>
    %7 = arith.addf %4, %6 : vector<32x32xf32>
    %cst_6 = arith.constant 0.000000e+00 : f32
    %8 = vector.broadcast %cst_6 : f32 to vector<32x32xf32>
    %9 = arith.maximumf %7, %8 : vector<32x32xf32>
    %cst_7 = arith.constant 0.000000e+00 : f32
    %10 = vector.broadcast %cst_7 : f32 to vector<32x32xf32>
    %c0_8 = arith.constant 0 : index
    %c0_9 = arith.constant 0 : index
    %c0_10 = arith.constant 0 : index
    %11 = vector.load %arg5[%c0_8, %c0_9, %c0_10] : memref<9x32x32xf32, #tpu.memory_space<vmem>>, vector<1x32x32xf32>
    %12 = vector.shape_cast %11 : vector<1x32x32xf32> to vector<32x32xf32>
    %cst_11 = arith.constant dense<0.000000e+00> : vector<32x32xf32>
    %13 = tpu.matmul %9, %12, %cst_11 {dimension_numbers = #tpu.dot_dimension_numbers<[1], [0], [0], [1], [0, 0, 1, 1], [], []>} : vector<32x32xf32>, vector<32x32xf32>, vector<32x32xf32> -> vector<32x32xf32>
    %c0_12 = arith.constant 0 : index
    %c0_13 = arith.constant 0 : index
    %c0_14 = arith.constant 0 : index
    %14 = vector.load %arg4[%c0_12, %c0_13, %c0_14] : memref<9x32x32xf32, #tpu.memory_space<vmem>>, vector<1x32x32xf32>
    %15 = vector.shape_cast %14 : vector<1x32x32xf32> to vector<32x32xf32>
    %cst_15 = arith.constant dense<0.000000e+00> : vector<32x32xf32>
    %16 = tpu.matmul %15, %13, %cst_15 {dimension_numbers = #tpu.dot_dimension_numbers<[1], [0], [0], [1], [0, 0, 1, 1], [], []>} : vector<32x32xf32>, vector<32x32xf32>, vector<32x32xf32> -> vector<32x32xf32>
    %17 = arith.addf %10, %16 : vector<32x32xf32>
    %c1 = arith.constant 1 : index
    %c0_16 = arith.constant 0 : index
    %c0_17 = arith.constant 0 : index
    %18 = vector.load %arg5[%c1, %c0_16, %c0_17] : memref<9x32x32xf32, #tpu.memory_space<vmem>>, vector<1x32x32xf32>
    %19 = vector.shape_cast %18 : vector<1x32x32xf32> to vector<32x32xf32>
    %cst_18 = arith.constant dense<0.000000e+00> : vector<32x32xf32>
    %20 = tpu.matmul %9, %19, %cst_18 {dimension_numbers = #tpu.dot_dimension_numbers<[1], [0], [0], [1], [0, 0, 1, 1], [], []>} : vector<32x32xf32>, vector<32x32xf32>, vector<32x32xf32> -> vector<32x32xf32>
    %c1_19 = arith.constant 1 : index
    %c0_20 = arith.constant 0 : index
    %c0_21 = arith.constant 0 : index
    %21 = vector.load %arg4[%c1_19, %c0_20, %c0_21] : memref<9x32x32xf32, #tpu.memory_space<vmem>>, vector<1x32x32xf32>
    %22 = vector.shape_cast %21 : vector<1x32x32xf32> to vector<32x32xf32>
    %cst_22 = arith.constant dense<0.000000e+00> : vector<32x32xf32>
    %23 = tpu.matmul %22, %20, %cst_22 {dimension_numbers = #tpu.dot_dimension_numbers<[1], [0], [0], [1], [0, 0, 1, 1], [], []>} : vector<32x32xf32>, vector<32x32xf32>, vector<32x32xf32> -> vector<32x32xf32>
    %24 = arith.addf %17, %23 : vector<32x32xf32>
    %c2 = arith.constant 2 : index
    %c0_23 = arith.constant 0 : index
    %c0_24 = arith.constant 0 : index
    %25 = vector.load %arg5[%c2, %c0_23, %c0_24] : memref<9x32x32xf32, #tpu.memory_space<vmem>>, vector<1x32x32xf32>
    %26 = vector.shape_cast %25 : vector<1x32x32xf32> to vector<32x32xf32>
    %cst_25 = arith.constant dense<0.000000e+00> : vector<32x32xf32>
    %27 = tpu.matmul %9, %26, %cst_25 {dimension_numbers = #tpu.dot_dimension_numbers<[1], [0], [0], [1], [0, 0, 1, 1], [], []>} : vector<32x32xf32>, vector<32x32xf32>, vector<32x32xf32> -> vector<32x32xf32>
    %c2_26 = arith.constant 2 : index
    %c0_27 = arith.constant 0 : index
    %c0_28 = arith.constant 0 : index
    %28 = vector.load %arg4[%c2_26, %c0_27, %c0_28] : memref<9x32x32xf32, #tpu.memory_space<vmem>>, vector<1x32x32xf32>
    %29 = vector.shape_cast %28 : vector<1x32x32xf32> to vector<32x32xf32>
    %cst_29 = arith.constant dense<0.000000e+00> : vector<32x32xf32>
    %30 = tpu.matmul %29, %27, %cst_29 {dimension_numbers = #tpu.dot_dimension_numbers<[1], [0], [0], [1], [0, 0, 1, 1], [], []>} : vector<32x32xf32>, vector<32x32xf32>, vector<32x32xf32> -> vector<32x32xf32>
    %31 = arith.addf %24, %30 : vector<32x32xf32>
    %c3 = arith.constant 3 : index
    %c0_30 = arith.constant 0 : index
    %c0_31 = arith.constant 0 : index
    %32 = vector.load %arg5[%c3, %c0_30, %c0_31] : memref<9x32x32xf32, #tpu.memory_space<vmem>>, vector<1x32x32xf32>
    %33 = vector.shape_cast %32 : vector<1x32x32xf32> to vector<32x32xf32>
    %cst_32 = arith.constant dense<0.000000e+00> : vector<32x32xf32>
    %34 = tpu.matmul %9, %33, %cst_32 {dimension_numbers = #tpu.dot_dimension_numbers<[1], [0], [0], [1], [0, 0, 1, 1], [], []>} : vector<32x32xf32>, vector<32x32xf32>, vector<32x32xf32> -> vector<32x32xf32>
    %c3_33 = arith.constant 3 : index
    %c0_34 = arith.constant 0 : index
    %c0_35 = arith.constant 0 : index
    %35 = vector.load %arg4[%c3_33, %c0_34, %c0_35] : memref<9x32x32xf32, #tpu.memory_space<vmem>>, vector<1x32x32xf32>
    %36 = vector.shape_cast %35 : vector<1x32x32xf32> to vector<32x32xf32>
    %cst_36 = arith.constant dense<0.000000e+00> : vector<32x32xf32>
    %37 = tpu.matmul %36, %34, %cst_36 {dimension_numbers = #tpu.dot_dimension_numbers<[1], [0], [0], [1], [0, 0, 1, 1], [], []>} : vector<32x32xf32>, vector<32x32xf32>, vector<32x32xf32> -> vector<32x32xf32>
    %38 = arith.addf %31, %37 : vector<32x32xf32>
    %c4 = arith.constant 4 : index
    %c0_37 = arith.constant 0 : index
    %c0_38 = arith.constant 0 : index
    %39 = vector.load %arg5[%c4, %c0_37, %c0_38] : memref<9x32x32xf32, #tpu.memory_space<vmem>>, vector<1x32x32xf32>
    %40 = vector.shape_cast %39 : vector<1x32x32xf32> to vector<32x32xf32>
    %cst_39 = arith.constant dense<0.000000e+00> : vector<32x32xf32>
    %41 = tpu.matmul %9, %40, %cst_39 {dimension_numbers = #tpu.dot_dimension_numbers<[1], [0], [0], [1], [0, 0, 1, 1], [], []>} : vector<32x32xf32>, vector<32x32xf32>, vector<32x32xf32> -> vector<32x32xf32>
    %c4_40 = arith.constant 4 : index
    %c0_41 = arith.constant 0 : index
    %c0_42 = arith.constant 0 : index
    %42 = vector.load %arg4[%c4_40, %c0_41, %c0_42] : memref<9x32x32xf32, #tpu.memory_space<vmem>>, vector<1x32x32xf32>
    %43 = vector.shape_cast %42 : vector<1x32x32xf32> to vector<32x32xf32>
    %cst_43 = arith.constant dense<0.000000e+00> : vector<32x32xf32>
    %44 = tpu.matmul %43, %41, %cst_43 {dimension_numbers = #tpu.dot_dimension_numbers<[1], [0], [0], [1], [0, 0, 1, 1], [], []>} : vector<32x32xf32>, vector<32x32xf32>, vector<32x32xf32> -> vector<32x32xf32>
    %45 = arith.addf %38, %44 : vector<32x32xf32>
    %c5 = arith.constant 5 : index
    %c0_44 = arith.constant 0 : index
    %c0_45 = arith.constant 0 : index
    %46 = vector.load %arg5[%c5, %c0_44, %c0_45] : memref<9x32x32xf32, #tpu.memory_space<vmem>>, vector<1x32x32xf32>
    %47 = vector.shape_cast %46 : vector<1x32x32xf32> to vector<32x32xf32>
    %cst_46 = arith.constant dense<0.000000e+00> : vector<32x32xf32>
    %48 = tpu.matmul %9, %47, %cst_46 {dimension_numbers = #tpu.dot_dimension_numbers<[1], [0], [0], [1], [0, 0, 1, 1], [], []>} : vector<32x32xf32>, vector<32x32xf32>, vector<32x32xf32> -> vector<32x32xf32>
    %c5_47 = arith.constant 5 : index
    %c0_48 = arith.constant 0 : index
    %c0_49 = arith.constant 0 : index
    %49 = vector.load %arg4[%c5_47, %c0_48, %c0_49] : memref<9x32x32xf32, #tpu.memory_space<vmem>>, vector<1x32x32xf32>
    %50 = vector.shape_cast %49 : vector<1x32x32xf32> to vector<32x32xf32>
    %cst_50 = arith.constant dense<0.000000e+00> : vector<32x32xf32>
    %51 = tpu.matmul %50, %48, %cst_50 {dimension_numbers = #tpu.dot_dimension_numbers<[1], [0], [0], [1], [0, 0, 1, 1], [], []>} : vector<32x32xf32>, vector<32x32xf32>, vector<32x32xf32> -> vector<32x32xf32>
    %52 = arith.addf %45, %51 : vector<32x32xf32>
    %c6 = arith.constant 6 : index
    %c0_51 = arith.constant 0 : index
    %c0_52 = arith.constant 0 : index
    %53 = vector.load %arg5[%c6, %c0_51, %c0_52] : memref<9x32x32xf32, #tpu.memory_space<vmem>>, vector<1x32x32xf32>
    %54 = vector.shape_cast %53 : vector<1x32x32xf32> to vector<32x32xf32>
    %cst_53 = arith.constant dense<0.000000e+00> : vector<32x32xf32>
    %55 = tpu.matmul %9, %54, %cst_53 {dimension_numbers = #tpu.dot_dimension_numbers<[1], [0], [0], [1], [0, 0, 1, 1], [], []>} : vector<32x32xf32>, vector<32x32xf32>, vector<32x32xf32> -> vector<32x32xf32>
    %c6_54 = arith.constant 6 : index
    %c0_55 = arith.constant 0 : index
    %c0_56 = arith.constant 0 : index
    %56 = vector.load %arg4[%c6_54, %c0_55, %c0_56] : memref<9x32x32xf32, #tpu.memory_space<vmem>>, vector<1x32x32xf32>
    %57 = vector.shape_cast %56 : vector<1x32x32xf32> to vector<32x32xf32>
    %cst_57 = arith.constant dense<0.000000e+00> : vector<32x32xf32>
    %58 = tpu.matmul %57, %55, %cst_57 {dimension_numbers = #tpu.dot_dimension_numbers<[1], [0], [0], [1], [0, 0, 1, 1], [], []>} : vector<32x32xf32>, vector<32x32xf32>, vector<32x32xf32> -> vector<32x32xf32>
    %59 = arith.addf %52, %58 : vector<32x32xf32>
    %c7 = arith.constant 7 : index
    %c0_58 = arith.constant 0 : index
    %c0_59 = arith.constant 0 : index
    %60 = vector.load %arg5[%c7, %c0_58, %c0_59] : memref<9x32x32xf32, #tpu.memory_space<vmem>>, vector<1x32x32xf32>
    %61 = vector.shape_cast %60 : vector<1x32x32xf32> to vector<32x32xf32>
    %cst_60 = arith.constant dense<0.000000e+00> : vector<32x32xf32>
    %62 = tpu.matmul %9, %61, %cst_60 {dimension_numbers = #tpu.dot_dimension_numbers<[1], [0], [0], [1], [0, 0, 1, 1], [], []>} : vector<32x32xf32>, vector<32x32xf32>, vector<32x32xf32> -> vector<32x32xf32>
    %c7_61 = arith.constant 7 : index
    %c0_62 = arith.constant 0 : index
    %c0_63 = arith.constant 0 : index
    %63 = vector.load %arg4[%c7_61, %c0_62, %c0_63] : memref<9x32x32xf32, #tpu.memory_space<vmem>>, vector<1x32x32xf32>
    %64 = vector.shape_cast %63 : vector<1x32x32xf32> to vector<32x32xf32>
    %cst_64 = arith.constant dense<0.000000e+00> : vector<32x32xf32>
    %65 = tpu.matmul %64, %62, %cst_64 {dimension_numbers = #tpu.dot_dimension_numbers<[1], [0], [0], [1], [0, 0, 1, 1], [], []>} : vector<32x32xf32>, vector<32x32xf32>, vector<32x32xf32> -> vector<32x32xf32>
    %66 = arith.addf %59, %65 : vector<32x32xf32>
    %c8 = arith.constant 8 : index
    %c0_65 = arith.constant 0 : index
    %c0_66 = arith.constant 0 : index
    %67 = vector.load %arg5[%c8, %c0_65, %c0_66] : memref<9x32x32xf32, #tpu.memory_space<vmem>>, vector<1x32x32xf32>
    %68 = vector.shape_cast %67 : vector<1x32x32xf32> to vector<32x32xf32>
    %cst_67 = arith.constant dense<0.000000e+00> : vector<32x32xf32>
    %69 = tpu.matmul %9, %68, %cst_67 {dimension_numbers = #tpu.dot_dimension_numbers<[1], [0], [0], [1], [0, 0, 1, 1], [], []>} : vector<32x32xf32>, vector<32x32xf32>, vector<32x32xf32> -> vector<32x32xf32>
    %c8_68 = arith.constant 8 : index
    %c0_69 = arith.constant 0 : index
    %c0_70 = arith.constant 0 : index
    %70 = vector.load %arg4[%c8_68, %c0_69, %c0_70] : memref<9x32x32xf32, #tpu.memory_space<vmem>>, vector<1x32x32xf32>
    %71 = vector.shape_cast %70 : vector<1x32x32xf32> to vector<32x32xf32>
    %cst_71 = arith.constant dense<0.000000e+00> : vector<32x32xf32>
    %72 = tpu.matmul %71, %69, %cst_71 {dimension_numbers = #tpu.dot_dimension_numbers<[1], [0], [0], [1], [0, 0, 1, 1], [], []>} : vector<32x32xf32>, vector<32x32xf32>, vector<32x32xf32> -> vector<32x32xf32>
    %73 = arith.addf %66, %72 : vector<32x32xf32>
    %c0_72 = arith.constant 0 : index
    %c0_73 = arith.constant 0 : index
    %74 = vector.load %arg6[%c0_72, %c0_73] : memref<1x32xf32, #tpu.memory_space<vmem>>, vector<1x32xf32>
    %75 = vector.broadcast %74 : vector<1x32xf32> to vector<32x32xf32>
    %76 = arith.addf %73, %75 : vector<32x32xf32>
    %cst_74 = arith.constant 0.000000e+00 : f32
    %77 = vector.broadcast %cst_74 : f32 to vector<32x32xf32>
    %78 = arith.maximumf %76, %77 : vector<32x32xf32>
    %79 = arith.truncf %78 : vector<32x32xf32> to vector<32x32xbf16>
    %c0_75 = arith.constant 0 : index
    %c0_76 = arith.constant 0 : index
    %80 = vector.load %arg7[%c0_75, %c0_76] : memref<32x512xbf16, #tpu.memory_space<vmem>>, vector<32x512xbf16>
    %cst_77 = arith.constant dense<0.000000e+00> : vector<32x512xf32>
    %81 = tpu.matmul %79, %80, %cst_77 {dimension_numbers = #tpu.dot_dimension_numbers<[1], [0], [0], [1], [0, 0, 1, 1], [], []>} : vector<32x32xbf16>, vector<32x512xbf16>, vector<32x512xf32> -> vector<32x512xf32>
    %c0_78 = arith.constant 0 : index
    %c0_79 = arith.constant 0 : index
    %82 = vector.load %arg8[%c0_78, %c0_79] : memref<1x512xf32, #tpu.memory_space<vmem>>, vector<1x512xf32>
    %83 = vector.broadcast %82 : vector<1x512xf32> to vector<32x512xf32>
    %84 = arith.addf %81, %83 : vector<32x512xf32>
    %85 = arith.addf %84, %1 : vector<32x512xf32>
    %cst_80 = arith.constant 0.000000e+00 : f32
    %86 = vector.broadcast %cst_80 : f32 to vector<32x512xf32>
    %87 = arith.maximumf %85, %86 : vector<32x512xf32>
    %c0_81 = arith.constant 0 : index
    %c0_82 = arith.constant 0 : index
    %c0_83 = arith.constant 0 : index
    %88 = vector.load %arg9[%c0_81, %c0_82, %c0_83] : memref<1x32x512xf32, #tpu.memory_space<vmem>>, vector<1x32x512xf32>
    %89 = vector.shape_cast %88 : vector<1x32x512xf32> to vector<32x512xf32>
    %90 = vector.shape_cast %87 : vector<32x512xf32> to vector<1x32x512xf32>
    tpu.vector_store %arg9[%c0_81, %c0_82, %c0_83], %90 {strides = array<i32>} : memref<1x32x512xf32, #tpu.memory_space<vmem>>, vector<1x32x512xf32>,
    return
  }
  func.func @transform_0(%arg0: i32) -> (i32, i32, i32) {
    %c0_i32 = arith.constant 0 : i32
    %c0_i32_0 = arith.constant 0 : i32
    %c0_i32_1 = arith.constant 0 : i32
    return %arg0, %c0_i32, %c0_i32_0 : i32, i32, i32
  }
  func.func @transform_1(%arg0: i32) -> (i32, i32) {
    %c0_i32 = arith.constant 0 : i32
    %c0_i32_0 = arith.constant 0 : i32
    %c0_i32_1 = arith.constant 0 : i32
    return %c0_i32, %c0_i32_0 : i32, i32
  }
  func.func @transform_2(%arg0: i32) -> (i32, i32) {
    %c0_i32 = arith.constant 0 : i32
    %c0_i32_0 = arith.constant 0 : i32
    %c0_i32_1 = arith.constant 0 : i32
    return %c0_i32, %c0_i32_0 : i32, i32
  }
  func.func @transform_3(%arg0: i32) -> (i32, i32, i32) {
    %c0_i32 = arith.constant 0 : i32
    %c0_i32_0 = arith.constant 0 : i32
    %c0_i32_1 = arith.constant 0 : i32
    %c0_i32_2 = arith.constant 0 : i32
    return %c0_i32, %c0_i32_0, %c0_i32_1 : i32, i32, i32
  }
  func.func @transform_4(%arg0: i32) -> (i32, i32, i32) {
    %c0_i32 = arith.constant 0 : i32
    %c0_i32_0 = arith.constant 0 : i32
    %c0_i32_1 = arith.constant 0 : i32
    %c0_i32_2 = arith.constant 0 : i32
    return %c0_i32, %c0_i32_0, %c0_i32_1 : i32, i32, i32
  }
  func.func @transform_5(%arg0: i32) -> (i32, i32) {
    %c0_i32 = arith.constant 0 : i32
    %c0_i32_0 = arith.constant 0 : i32
    %c0_i32_1 = arith.constant 0 : i32
    return %c0_i32, %c0_i32_0 : i32, i32
  }
  func.func @transform_6(%arg0: i32) -> (i32, i32) {
    %c0_i32 = arith.constant 0 : i32
    %c0_i32_0 = arith.constant 0 : i32
    %c0_i32_1 = arith.constant 0 : i32
    return %c0_i32, %c0_i32_0 : i32, i32
  }
  func.func @transform_7(%arg0: i32) -> (i32, i32) {
    %c0_i32 = arith.constant 0 : i32
    %c0_i32_0 = arith.constant 0 : i32
    %c0_i32_1 = arith.constant 0 : i32
    return %c0_i32, %c0_i32_0 : i32, i32
  }
  func.func @transform_8(%arg0: i32) -> (i32, i32, i32) {
    %c0_i32 = arith.constant 0 : i32
    %c0_i32_0 = arith.constant 0 : i32
    %c0_i32_1 = arith.constant 0 : i32
    return %arg0, %c0_i32, %c0_i32_0 : i32, i32, i32
  }
}

</mosaic_0001>

<bundles_post_ra>
// kernel: resnext_bottleneck_forward.1
= control target key start
LH: loop header
LB: loop body
LE: loop exit
PB: predicated region body
PF: predicated region fallthrough
CT: control target
= control target key end

     0   :  { %s3695_s27 = smov 0   ;;  %s4288_s0 = inlined_call_operand.vmem [shape: f32[2,32,512], index: 0, kind: input, shape index: {}]   ;;  %s4289_s1 = inlined_call_operand.vmem [shape: bf16[512,32], index: 1, kind: input, shape index: {}]   ;;  %s4290_s2 = inlined_call_operand.vmem [shape: f32[1,32], index: 2, kind: input, shape index: {}]   ;;  %s4291_s3 = inlined_call_operand.vmem [shape: f32[9,32,32], index: 3, kind: input, shape index: {}]   ;;  %s4292_s4 = inlined_call_operand.vmem [shape: f32[9,32,32], index: 4, kind: input, shape index: {}]   ;;  %s4293_s5 = inlined_call_operand.vmem [shape: f32[1,32], index: 5, kind: input, shape index: {}]   ;;  %s4294_s6 = inlined_call_operand.vmem [shape: bf16[32,512], index: 6, kind: input, shape index: {}]   ;;  %s4295_s7 = inlined_call_operand.vmem [shape: f32[1,512], index: 7, kind: input, shape index: {}]   ;;  %s4296_s8 = inlined_call_operand.vmem [shape: f32[2,32,512], index: 8, kind: output, shape index: {}]  }
   0x1 LB: > { %s2765_s28 = sadd.s32 4294967295, %s3647_s27   ;;  %p2769_p0 = scmp.ge.s32.totalorder %s3647_s27, 1  ;;  %s3647_s27 = sphi %s3695_s27, %s18_s27  }
   0x2   : > { %p262_p1 = scmp.lt.s32.totalorder %s3647_s27, 3 }
   0x4   : > { %p263_p2 = pnand %p2769_p0, %p262_p1 }
   0x5   : > { %v3597_v0 = vld [vmem:[%s4289_s1 + $0x40] sm:$0xff] (!%p263_p2)   ;;  %v3601_v4 = vld [vmem:[%s4289_s1 + $0x48] sm:$0xff] (!%p263_p2)   ;;  %v3605_v8 = vld [vmem:[%s4289_s1 + $0x50] sm:$0xff] (!%p263_p2)   ;;  %p296_p3 = scmp.lt.s32.totalorder (!%p263_p2), %s2765_s28, 1  ;;  %vm700_vm0 = vcmask (!%p263_p2), 261120  }
   0x6   : > { %266 = sbr.rel (%p263_p2) target bundleno = 1010 (0x3f2), region = 52  ;;  %v3598_v1 = vld [vmem:[%s4289_s1 + $0xc0] sm:$0xff] (!%p263_p2)   ;;  %2960 = vmatprep.subr.bf16.mxu0 (!%p263_p2), %v3597_v0  ;;  %v3602_v5 = vld [vmem:[%s4289_s1 + $0xc8] sm:$0xff] (!%p263_p2)   ;;  %v3606_v9 = vld [vmem:[%s4289_s1 + $0xd0] sm:$0xff] (!%p263_p2)  }
   0x7   : > { %v3599_v2 = vld [vmem:[%s4289_s1] sm:$0xff] (!%p263_p2)   ;;  %2988 = vmatprep.subr.bf16.mxu1 (!%p263_p2), %v3598_v1  ;;  %v3603_v6 = vld [vmem:[%s4289_s1 + $0x8] sm:$0xff] (!%p263_p2)   ;;  %v3607_v10 = vld [vmem:[%s4289_s1 + $0x10] sm:$0xff] (!%p263_p2)  }
   0x8   : > { %v3600_v3 = vld [vmem:[%s4289_s1 + $0x80] sm:$0xff] (!%p263_p2)   ;;  %2961 = vmatpush3.bf16.msra.mxu0 (!%p263_p2), %v3599_v2  ;;  %v3604_v7 = vld [vmem:[%s4289_s1 + $0x88] sm:$0xff] (!%p263_p2)   ;;  %v3608_v11 = vld [vmem:[%s4289_s1 + $0x90] sm:$0xff] (!%p263_p2)  }
   0x9   : > { %2989 = vmatpush3.bf16.msra.mxu1 (!%p263_p2), %v3600_v3  ;;  %2962 = vmatprep.subr.bf16.mxu0 (!%p263_p2), %v3601_v4  ;;  %v3609_v12 = vld [vmem:[%s4289_s1 + $0x58] sm:$0xff] (!%p263_p2)   ;;  %v3613_v16 = vld [vmem:[%s4289_s1 + $0x60] sm:$0xff] (!%p263_p2)   ;;  %v3617_v20 = vld [vmem:[%s4289_s1 + $0x68] sm:$0xff] (!%p263_p2)  }
   0xa   : > { %2990 = vmatprep.subr.bf16.mxu1 (!%p263_p2), %v3602_v5  ;;  %v3610_v13 = vld [vmem:[%s4289_s1 + $0xd8] sm:$0xff] (!%p263_p2)   ;;  %v3614_v17 = vld [vmem:[%s4289_s1 + $0xe0] sm:$0xff] (!%p263_p2)   ;;  %v3618_v21 = vld [vmem:[%s4289_s1 + $0xe8] sm:$0xff] (!%p263_p2)  }
   0xb   : > { %v3611_v14 = vld [vmem:[%s4289_s1 + $0x18] sm:$0xff] (!%p263_p2)   ;;  %v3615_v18 = vld [vmem:[%s4289_s1 + $0x20] sm:$0xff] (!%p263_p2)   ;;  %v3619_v22 = vld [vmem:[%s4289_s1 + $0x28] sm:$0xff] (!%p263_p2)  }
   0xc   : > { %2963 = vmatpush3.bf16.msra.mxu0 (!%p263_p2), %v3603_v6  ;;  %v3612_v15 = vld [vmem:[%s4289_s1 + $0x98] sm:$0xff] (!%p263_p2)   ;;  %v3616_v19 = vld [vmem:[%s4289_s1 + $0xa0] sm:$0xff] (!%p263_p2)   ;;  %v3620_v23 = vld [vmem:[%s4289_s1 + $0xa8] sm:$0xff] (!%p263_p2)  }
   0xd   : > { %2991 = vmatpush3.bf16.msra.mxu1 %v3604_v7  ;;  %2964 = vmatprep.subr.bf16.mxu0 %v3605_v8  ;;  %s4298_s28 = smov (!%p296_p3, %s2765_s28), 1  ;;  %v3621_v24 = vld [vmem:[%s4289_s1 + $0x70] sm:$0xff]   ;;  %v3625_v28 = vld [vmem:[%s4289_s1 + $0x78] sm:$0xff]   ;;  %v696_v56 = vld [vmem:[%s4292_s4] sm:$0xff] }
   0xe   : > { %2992 = vmatprep.subr.bf16.mxu1 %v3606_v9  ;;  %v3622_v25 = vld [vmem:[%s4289_s1 + $0xf0] sm:$0xff]   ;;  %s2958_s21 = sshll.u32 %s4298_s28, 7  ;;  %v3626_v29 = vld [vmem:[%s4289_s1 + $0xf8] sm:$0xff]   ;;  %v697_v57 = vld [vmem:[%s4292_s4 + $0x8] sm:$0xff] }
   0xf   : > { %v3623_v26 = vld [vmem:[%s4289_s1 + $0x30] sm:$0xff]   ;;  %s3805_s10 = scalar_lea.vmem %s4288_s0, %s2958_s21  ;;  %v3627_v30 = vld [vmem:[%s4289_s1 + $0x38] sm:$0xff]   ;;  %v3412_v58 = vpack.c.bf16 %v697_v57, %v696_v56  ;;  %v2811_v62 = vld [vmem:[%s4292_s4 + $0x20] sm:$0xff]  ;;  %s4253_s12 = scalar_lea.vmem %s4296_s8, %s2958_s21 }
  0x10   : > { %2965 = vmatpush3.bf16.msra.mxu0 %v3607_v10  ;;  %v3624_v27 = vld [vmem:[%s4289_s1 + $0xb0] sm:$0xff]   ;;  %v3628_v31 = vld [vmem:[%s4289_s1 + $0xb8] sm:$0xff]   ;;  %v3814_v32 = vld [vmem:[%s3805_s10 + $0x8] sm:$0xff] }
  0x11   : > { %2993 = vmatpush3.bf16.msra.mxu1 %v3608_v11  ;;  %2966 = vmatprep.subr.bf16.mxu0 %v3609_v12  ;;  %v3817_v33 = vld [vmem:[%s3805_s10 + $0x28] sm:$0xff]  ;;  %v3820_v34 = vld [vmem:[%s3805_s10 + $0x18] sm:$0xff]  ;;  %v3828_v37 = vld [vmem:[%s3805_s10] sm:$0xff] }
  0x12   : > { %2994 = vmatprep.subr.bf16.mxu1 %v3610_v13  ;;  %v324_v35 = vpack.c.bf16 %v3817_v33, %v3814_v32  ;;  %v3825_v36 = vld [vmem:[%s3805_s10 + $0x38] sm:$0xff]  ;;  %v3831_v38 = vld [vmem:[%s3805_s10 + $0x20] sm:$0xff]  ;;  %v3838_v41 = vld [vmem:[%s3805_s10 + $0x10] sm:$0xff] }
  0x13   : > { %v326_v39 = vpack.c.bf16 %v3825_v36, %v3820_v34  ;;  %v323_v40 = vpack.c.bf16 %v3831_v38, %v3828_v37  ;;  %v3841_v42 = vld [vmem:[%s3805_s10 + $0x30] sm:$0xff]  ;;  %v3844_v43 = vld [vmem:[%s3805_s10 + $0x48] sm:$0xff]  ;;  %v3852_v46 = vld [vmem:[%s3805_s10 + $0x58] sm:$0xff] }
  0x14   : > { %2967 = vmatpush3.bf16.msra.mxu0 %v3611_v14  ;;  %626 = vmatprep.mubr.bf16.mxu0 %v324_v35  ;;  %v325_v44 = vpack.c.bf16 %v3841_v42, %v3838_v41  ;;  %v3849_v45 = vld [vmem:[%s3805_s10 + $0x68] sm:$0xff]  ;;  %v3855_v47 = vld [vmem:[%s3805_s10 + $0x78] sm:$0xff]  ;;  %v3862_v50 = vld [vmem:[%s3805_s10 + $0x40] sm:$0xff] }
  0x15   : > { %2995 = vmatpush3.bf16.msra.mxu1 %v3612_v15  ;;  %2968 = vmatprep.subr.bf16.mxu0 %v3613_v16  ;;  %v328_v48 = vpack.c.bf16 %v3849_v45, %v3844_v43  ;;  %v330_v49 = vpack.c.bf16 %v3855_v47, %v3852_v46  ;;  %v3865_v51 = vld [vmem:[%s3805_s10 + $0x60] sm:$0xff]  ;;  %v3868_v52 = vld [vmem:[%s3805_s10 + $0x50] sm:$0xff]  ;;  %v699_v60 = vld [vmem:[%s4292_s4 + $0x18] sm:$0xff] }
  0x16   : > { %2996 = vmatprep.subr.bf16.mxu1 %v3614_v17  ;;  %675 = vmatprep.mubr.bf16.mxu1 %v326_v39  ;;  %v3871_v53 = vld [vmem:[%s3805_s10 + $0x70] sm:$0xff]  ;;  %v327_v54 = vpack.c.bf16 %v3865_v51, %v3862_v50  ;;  %v2812_v63 = vld [vmem:[%s4292_s4 + $0x28] sm:$0xff]  ;;  %v2774_v3 = vld [vmem:[%s4290_s2] ss:$0 sm:$0xff] }
  0x17   : > { %v329_v55 = vpack.c.bf16 %v3871_v53, %v3868_v52  ;;  %v698_v59 = vld [vmem:[%s4292_s4 + $0x10] sm:$0xff]  ;;  %v3420_v0 = vpack.c.bf16 %v2812_v63, %v2811_v62  ;;  %v2831_v35 = vld [vmem:[%s4292_s4 + $0x40] sm:$0xff]  ;;  %v2832_v39 = vld [vmem:[%s4292_s4 + $0x48] sm:$0xff] }
  0x18   : > { %2969 = vmatpush3.bf16.msra.mxu0 %v3615_v18  ;;  %v3416_v61 = vpack.c.bf16 %v699_v60, %v698_v59  ;;  %v2813_v17 = vld [vmem:[%s4292_s4 + $0x30] sm:$0xff]  ;;  %v2814_v18 = vld [vmem:[%s4292_s4 + $0x38] sm:$0xff]  ;;  %v3444_v56 = vpack.c.bf16 %v2832_v39, %v2831_v35  ;;  %v2847_v63 = vld [vmem:[%s4292_s4 + $0x60] sm:$0xff] }
  0x19   : > { %2997 = vmatpush3.bf16.msra.mxu1 %v3616_v19  ;;  %2970 = vmatprep.subr.bf16.mxu0 %v3617_v20  ;;  %v2833_v60 = vld [vmem:[%s4292_s4 + $0x50] sm:$0xff]  ;;  %v2928_v35 = vld [vmem:[%s4292_s4 + $0x108] sm:$0xff] }
  0x1a   : > { %2998 = vmatprep.subr.bf16.mxu1 %v3618_v21 }
  0x1c   : > { %2971 = vmatpush3.bf16.msra.mxu0 %v3619_v22 }
  0x1d   : > { %2999 = vmatpush3.bf16.msra.mxu1 %v3620_v23  ;;  %2972 = vmatprep.subr.bf16.mxu0 %v3621_v24 }
  0x1e   : > { %3000 = vmatprep.subr.bf16.mxu1 %v3622_v25 }
  0x20   : > { %2973 = vmatpush3.bf16.msra.mxu0 %v3623_v26 }
  0x21   : > { %3001 = vmatpush3.bf16.msra.mxu1 %v3624_v27  ;;  %2974 = vmatprep.subr.bf16.mxu0 %v3625_v28  ;;  %v3424_v28 = vpack.c.bf16 %v2814_v18, %v2813_v17  ;;  %v2895_v17 = vld [vmem:[%s4292_s4 + $0xc0] sm:$0xff]  ;;  %v2896_v18 = vld [vmem:[%s4292_s4 + $0xc8] sm:$0xff] }
  0x22   : > { %3002 = vmatprep.subr.bf16.mxu1 %v3626_v29 }
  0x24   : > { %2975 = vmatpush3.bf16.msra.mxu0 %v3627_v30 }
  0x25   : > { %3003 = vmatpush3.bf16.msra.mxu1 %v3628_v31 }
  0x26   : > { %3413 = vmatprep.subr.bf16.mxu1 %v3412_v58 }
  0x27   : > { %627 = vmatmul.mubr.bf16.vlgmr.msra.gmra.mrb[0].mxu0 %v323_v40 }
  0x28   : > { %676 = vmatmul.mubr.bf16.vlgmr.msra.gmra.mrb[0].mxu1 %v325_v44  ;;  %634 = vmatprep.mubr.bf16.mxu0 %v328_v48 }
  0x29   : > { %683 = vmatprep.mubr.bf16.mxu1 %v330_v49  ;;  %3415 = vmatpush3.bf16.msra.mxu1 %v3412_v58 }
  0x2a   : > { %3417 = vmatprep.subr.bf16.mxu1 %v3416_v61 }
  0x2d   : > { %3419 = vmatpush3.bf16.msra.mxu1 %v3416_v61  ;;  %v2834_v61 = vld [vmem:[%s4292_s4 + $0x58] sm:$0xff] }
  0x2e   : > { %3421 = vmatprep.subr.bf16.mxu1 %v3420_v0  ;;  %v3448_v62 = vpack.c.bf16 %v2834_v61, %v2833_v60 }
  0x2f   : > { %635 = vmatmul.mubr.bf16.gmra.mrb[4].mxu0 %v327_v54 }
  0x30   : > { %684 = vmatmul.mubr.bf16.gmra.mrb[4].mxu1 %v329_v55 }
  0xfa   : > { %v2976_v1 = vpop.f32.mrb[0].mxu0 }
  0xfb   : > { %v3004_v2 = vpop.f32.mrb[0].mxu1  ;;  %v2977_v4 = vpop.f32.mrb[1].mxu0 }
  0xfc   : > { %v2978_v5 = vadd.f32 %v2977_v4, %v2976_v1  ;;  %v3005_v6 = vpop.f32.mrb[1].mxu1  ;;  %v2979_v7 = vpop.f32.mrb[2].mxu0 }
  0xfd   : > { %v3006_v8 = vadd.f32 %v3005_v6, %v3004_v2  ;;  %v3007_v9 = vpop.f32.mrb[2].mxu1  ;;  %v2980_v10 = vpop.f32.mrb[3].mxu0  ;;  %v2849_v2 = vld [vmem:[%s4292_s4 + $0x70] sm:$0xff]  ;;  %v2864_v6 = vld [vmem:[%s4292_s4 + $0x88] sm:$0xff] }
  0xfe   : > { %v629_v11 = vadd.f32 %v2978_v5, %v2774_v3  ;;  %v2981_v12 = vadd.f32 %v2980_v10, %v2979_v7  ;;  %v3008_v13 = vpop.f32.mrb[3].mxu1  ;;  %v2863_v5 = vld [vmem:[%s4292_s4 + $0x80] sm:$0xff] }
  0xff   : > { %v3009_v14 = vadd.f32 %v3008_v13, %v3007_v9  ;;  %v3476_v7 = vpack.c.bf16 %v2864_v6, %v2863_v5  ;;  %v2866_v9 = vld [vmem:[%s4292_s4 + $0x98] sm:$0xff] }
 0x100   : > { %v678_v15 = vadd.f32 %v3006_v8, %v629_v11  ;;  %v632_v16 = vadd.f32 %v2981_v12, %v2774_v3  ;;  %v2865_v8 = vld [vmem:[%s4292_s4 + $0x90] sm:$0xff]  ;;  %v2879_v11 = vld [vmem:[%s4292_s4 + $0xa0] sm:$0xff]  ;;  %v2880_v12 = vld [vmem:[%s4292_s4 + $0xa8] sm:$0xff] }
 0x101   : > { %v3480_v10 = vpack.c.bf16 %v2866_v9, %v2865_v8  ;;  %v3492_v13 = vpack.c.bf16 %v2880_v12, %v2879_v11  ;;  %v798_v9 = vld [vmem:[%s4291_s3] sm:$0xff]  ;;  %v799_v12 = vld [vmem:[%s4291_s3 + $0x8] sm:$0xff] }
 0x102   : > { %v3904_v19 = vmax.f32 %v678_v15, 0.0  ;;  %v681_v20 = vadd.f32 %v3009_v14, %v632_v16  ;;  %v2982_v21 = vpop.f32.mrb[4].mxu0  ;;  %v2881_v14 = vld [vmem:[%s4292_s4 + $0xb0] sm:$0xff]  ;;  %v2882_v15 = vld [vmem:[%s4292_s4 + $0xb8] sm:$0xff] }
 0x103   : > { %v3010_v22 = vpop.f32.mrb[4].mxu1  ;;  %v2983_v23 = vpop.f32.mrb[5].mxu0  ;;  %v3496_v16 = vpack.c.bf16 %v2882_v15, %v2881_v14  ;;  %v800_v14 = vld [vmem:[%s4291_s3 + $0x10] sm:$0xff] }
 0x104   : > { %v3906_v24 = vmax.f32 %v681_v20, 0.0  ;;  %v2984_v25 = vadd.f32 %v2983_v23, %v2982_v21  ;;  %v3011_v26 = vpop.f32.mrb[5].mxu1  ;;  %v2985_v27 = vpop.f32.mrb[6].mxu0  ;;  %3168 = vmatprep.mubr.msk.f32.mxu1 %vm700_vm0, %v3904_v19  ;;  %v3508_v20 = vpack.c.bf16 %v2896_v18, %v2895_v17  ;;  %v2897_v21 = vld [vmem:[%s4292_s4 + $0xd0] sm:$0xff]  ;;  %v801_v17 = vld [vmem:[%s4291_s3 + $0x18] sm:$0xff] }
 0x105   : > { %v3012_v29 = vadd.f32 %v3011_v26, %v3010_v22  ;;  %v3013_v30 = vpop.f32.mrb[6].mxu1  ;;  %v2986_v31 = vpop.f32.mrb[7].mxu0  ;;  %v2898_v22 = vld [vmem:[%s4292_s4 + $0xd8] sm:$0xff]  ;;  %v2912_v26 = vld [vmem:[%s4292_s4 + $0xe8] sm:$0xff] }
 0x106   : > { %v637_v40 = vadd.f32 %v2984_v25, %v2774_v3  ;;  %v2987_v44 = vadd.f32 %v2986_v31, %v2985_v27  ;;  %v3014_v48 = vpop.f32.mrb[7].mxu1  ;;  %3169 = vmatmul.mubr.msk.f32.vlgmr.msra.gmra.mrb[8].mxu1 %vm700_vm0, %v3906_v24  ;;  %v3512_v23 = vpack.c.bf16 %v2898_v22, %v2897_v21  ;;  %v2911_v25 = vld [vmem:[%s4292_s4 + $0xe0] sm:$0xff] }
 0x107   : > { %v3015_v49 = vadd.f32 %v3014_v48, %v3013_v30  ;;  %3423 = vmatpush3.bf16.msra.mxu1 %v3420_v0  ;;  %v2848_v0 = vld [vmem:[%s4292_s4 + $0x68] sm:$0xff]  ;;  %v3524_v27 = vpack.c.bf16 %v2912_v26, %v2911_v25  ;;  %v2927_v31 = vld [vmem:[%s4292_s4 + $0x100] sm:$0xff]  ;;  %v2841_v26 = vld [vmem:[%s4291_s3 + $0x50] sm:$0xff] }
 0x108   : > { %v686_v54 = vadd.f32 %v3012_v29, %v637_v40  ;;  %v640_v55 = vadd.f32 %v2987_v44, %v2774_v3  ;;  %3425 = vmatprep.subr.bf16.mxu1 %v3424_v28  ;;  %v3460_v1 = vpack.c.bf16 %v2848_v0, %v2847_v63  ;;  %v2850_v3 = vld [vmem:[%s4292_s4 + $0x78] sm:$0xff]  ;;  %v3540_v39 = vpack.c.bf16 %v2928_v35, %v2927_v31  ;;  %v2929_v40 = vld [vmem:[%s4292_s4 + $0x110] sm:$0xff]  ;;  %v2855_v31 = vld [vmem:[%s4291_s3 + $0x60] sm:$0xff] }
 0x109   : > { %v3464_v4 = vpack.c.bf16 %v2850_v3, %v2849_v2  ;;  %v2914_v29 = vld [vmem:[%s4292_s4 + $0xf8] sm:$0xff]  ;;  %v2820_v2 = vld [vmem:[%s4291_s3 + $0x28] sm:$0xff] }
 0x10a   : > { %v3918_v57 = vmax.f32 %v686_v54, 0.0  ;;  %v689_v58 = vadd.f32 %v3015_v49, %v640_v55  ;;  %v2930_v44 = vld [vmem:[%s4292_s4 + $0x118] sm:$0xff]  ;;  %v2819_v49 = vld [vmem:[%s4291_s3 + $0x20] sm:$0xff] }
 0x10b   : > { %3427 = vmatpush3.bf16.msra.mxu1 %v3424_v28  ;;  %v2913_v28 = vld [vmem:[%s4292_s4 + $0xf0] sm:$0xff]  ;;  %v3544_v48 = vpack.c.bf16 %v2930_v44, %v2929_v40  ;;  %3196 = vmatprep.mubr.msk.f32.mxu0 %vm700_vm0, %v2819_v49  ;;  %v2856_v40 = vld [vmem:[%s4291_s3 + $0x68] sm:$0xff] }
 0x10c   : > { %v3920_v59 = vmax.f32 %v689_v58, 0.0  ;;  %3171 = vmatprep.mubr.msk.f32.mxu1 %vm700_vm0, %v3918_v57  ;;  %3445 = vmatprep.subr.bf16.mxu1 %v3444_v56  ;;  %v3528_v30 = vpack.c.bf16 %v2914_v29, %v2913_v28  ;;  %v2842_v29 = vld [vmem:[%s4291_s3 + $0x58] sm:$0xff] }
 0x10e   : > { %3172 = vmatmul.mubr.msk.f32.gmra.mrb[10].mxu1 %vm700_vm0, %v3920_v59 }
 0x10f   : > { %3182 = vmatprep.mubr.msk.f32.mxu1 %vm700_vm0, %v3904_v19 }
 0x112   : > { %3183 = vmatmul.mubr.msk.f32.vlgmr.msra.gmra.mrb[12].mxu1 %vm700_vm0, %v3906_v24 }
 0x113   : > { %3185 = vmatprep.mubr.msk.f32.mxu1 %vm700_vm0, %v3918_v57  ;;  %3447 = vmatpush3.bf16.msra.mxu1 %v3444_v56 }
 0x114   : > { %3449 = vmatprep.subr.bf16.mxu1 %v3448_v62 }
 0x116   : > { %3186 = vmatmul.mubr.msk.f32.gmra.mrb[14].mxu1 %vm700_vm0, %v3920_v59 }
 0x117   : > { %3451 = vmatpush3.bf16.msra.mxu1 %v3448_v62  ;;  %3224 = vmatprep.mubr.msk.f32.mxu1 %vm700_vm0, %v3904_v19 }
 0x118   : > { %3461 = vmatprep.subr.bf16.mxu1 %v3460_v1 }
 0x11a   : > { %3225 = vmatmul.mubr.msk.f32.vlgmr.msra.gmra.mrb[16].mxu1 %vm700_vm0, %v3906_v24 }
 0x11b   : > { %3227 = vmatprep.mubr.msk.f32.mxu1 %vm700_vm0, %v3918_v57  ;;  %3463 = vmatpush3.bf16.msra.mxu1 %v3460_v1 }
 0x11c   : > { %3465 = vmatprep.subr.bf16.mxu1 %v3464_v4 }
 0x11e   : > { %3228 = vmatmul.mubr.msk.f32.gmra.mrb[18].mxu1 %vm700_vm0, %v3920_v59 }
 0x11f   : > { %3467 = vmatpush3.bf16.msra.mxu1 %v3464_v4  ;;  %3252 = vmatprep.mubr.msk.f32.mxu1 %vm700_vm0, %v3904_v19  ;;  %v2821_v4 = vld [vmem:[%s4291_s3 + $0x30] sm:$0xff] }
 0x120   : > { %3477 = vmatprep.subr.bf16.mxu1 %v3476_v7 }
 0x122   : > { %3253 = vmatmul.mubr.msk.f32.vlgmr.msra.gmra.mrb[20].mxu1 %vm700_vm0, %v3906_v24 }
 0x123   : > { %3255 = vmatprep.mubr.msk.f32.mxu1 %vm700_vm0, %v3918_v57  ;;  %3479 = vmatpush3.bf16.msra.mxu1 %v3476_v7  ;;  %v2822_v7 = vld [vmem:[%s4291_s3 + $0x38] sm:$0xff] }
 0x124   : > { %3481 = vmatprep.subr.bf16.mxu1 %v3480_v10 }
 0x126   : > { %3256 = vmatmul.mubr.msk.f32.gmra.mrb[22].mxu1 %vm700_vm0, %v3920_v59 }
 0x127   : > { %3483 = vmatpush3.bf16.msra.mxu1 %v3480_v10  ;;  %3280 = vmatprep.mubr.msk.f32.mxu1 %vm700_vm0, %v3904_v19 }
 0x128   : > { %3493 = vmatprep.subr.bf16.mxu1 %v3492_v13 }
 0x12a   : > { %3281 = vmatmul.mubr.msk.f32.vlgmr.msra.gmra.mrb[24].mxu1 %vm700_vm0, %v3906_v24 }
 0x12b   : > { %3283 = vmatprep.mubr.msk.f32.mxu1 %vm700_vm0, %v3918_v57  ;;  %3495 = vmatpush3.bf16.msra.mxu1 %v3492_v13 }
 0x12c   : > { %3497 = vmatprep.subr.bf16.mxu1 %v3496_v16 }
 0x12e   : > { %3284 = vmatmul.mubr.msk.f32.gmra.mrb[26].mxu1 %vm700_vm0, %v3920_v59 }
 0x12f   : > { %3499 = vmatpush3.bf16.msra.mxu1 %v3496_v16  ;;  %3308 = vmatprep.mubr.msk.f32.mxu1 %vm700_vm0, %v3904_v19 }
 0x130   : > { %3509 = vmatprep.subr.bf16.mxu1 %v3508_v20 }
 0x132   : > { %3309 = vmatmul.mubr.msk.f32.vlgmr.msra.gmra.mrb[28].mxu1 %vm700_vm0, %v3906_v24 }
 0x133   : > { %3311 = vmatprep.mubr.msk.f32.mxu1 %vm700_vm0, %v3918_v57  ;;  %3511 = vmatpush3.bf16.msra.mxu1 %v3508_v20  ;;  %v2839_v20 = vld [vmem:[%s4291_s3 + $0x40] sm:$0xff] }
 0x134   : > { %3513 = vmatprep.subr.bf16.mxu1 %v3512_v23 }
 0x136   : > { %3312 = vmatmul.mubr.msk.f32.gmra.mrb[30].mxu1 %vm700_vm0, %v3920_v59 }
 0x137   : > { %3515 = vmatpush3.bf16.msra.mxu1 %v3512_v23  ;;  %3336 = vmatprep.mubr.msk.f32.mxu1 %vm700_vm0, %v3904_v19  ;;  %v2840_v23 = vld [vmem:[%s4291_s3 + $0x48] sm:$0xff] }
 0x138   : > { %3525 = vmatprep.subr.bf16.mxu1 %v3524_v27 }
 0x13a   : > { %3337 = vmatmul.mubr.msk.f32.vlgmr.msra.gmra.mrb[32].mxu1 %vm700_vm0, %v3906_v24 }
 0x13b   : > { %3339 = vmatprep.mubr.msk.f32.mxu1 %vm700_vm0, %v3918_v57  ;;  %3527 = vmatpush3.bf16.msra.mxu1 %v3524_v27 }
 0x13c   : > { %3529 = vmatprep.subr.bf16.mxu1 %v3528_v30 }
 0x13e   : > { %3340 = vmatmul.mubr.msk.f32.gmra.mrb[34].mxu1 %vm700_vm0, %v3920_v59 }
 0x13f   : > { %3531 = vmatpush3.bf16.msra.mxu1 %v3528_v30  ;;  %3364 = vmatprep.mubr.msk.f32.mxu1 %vm700_vm0, %v3904_v19 }
 0x140   : > { %3541 = vmatprep.subr.bf16.mxu1 %v3540_v39 }
 0x142   : > { %3365 = vmatmul.mubr.msk.f32.vlgmr.msra.gmra.mrb[36].mxu1 %vm700_vm0, %v3906_v24 }
 0x143   : > { %3367 = vmatprep.mubr.msk.f32.mxu1 %vm700_vm0, %v3918_v57  ;;  %3543 = vmatpush3.bf16.msra.mxu1 %v3540_v39 }
 0x144   : > { %3545 = vmatprep.subr.bf16.mxu1 %v3544_v48 }
 0x146   : > { %3368 = vmatmul.mubr.msk.f32.gmra.mrb[38].mxu1 %vm700_vm0, %v3920_v59 }
 0x147   : > { %3547 = vmatpush3.bf16.msra.mxu1 %v3544_v48  ;;  %3392 = vmatprep.mubr.msk.f32.mxu1 %vm700_vm0, %v3904_v19  ;;  %v2857_v48 = vld [vmem:[%s4291_s3 + $0x70] sm:$0xff] }
 0x14a   : > { %3393 = vmatmul.mubr.msk.f32.vlgmr.msra.gmra.mrb[40].mxu1 %vm700_vm0, %v3906_v24 }
 0x14b   : > { %3395 = vmatprep.mubr.msk.f32.mxu1 %vm700_vm0, %v3918_v57 }
 0x14e   : > { %3396 = vmatmul.mubr.msk.f32.gmra.mrb[42].mxu1 %vm700_vm0, %v3920_v59 }
 0x1d9   : > { %v3170_v54 = vpop.f32.mrb[8].mxu1 }
 0x1da   : > { %v779_v55 = vpop.f32.mrb[9].mxu1 }
 0x1db   : > { %v3436_v56 = vpack.c.bf16 %v3170_v54, %v779_v55  ;;  %v2858_v55 = vld [vmem:[%s4291_s3 + $0x78] sm:$0xff] }
 0x1e1   : > { %v3173_v58 = vpop.f32.mrb[10].mxu1 }
 0x1e2   : > { %v789_v19 = vpop.f32.mrb[11].mxu1 }
 0x1e3   : > { %v3440_v60 = vpack.c.bf16 %v3173_v58, %v789_v19  ;;  %v2871_v58 = vld [vmem:[%s4291_s3 + $0x80] sm:$0xff] }
 0x1e5   : > { %v3184_v61 = vpop.f32.mrb[12].mxu1 }
 0x1e6   : > { %v873_v24 = vpop.f32.mrb[13].mxu1 }
 0x1e7   : > { %v3428_v62 = vpack.c.bf16 %v3184_v61, %v873_v24  ;;  %v2872_v61 = vld [vmem:[%s4291_s3 + $0x88] sm:$0xff] }
 0x1e9   : > { %v3187_v63 = vpop.f32.mrb[14].mxu1  ;;  %3429 = vmatprep.subr.bf16.mxu0 %v3428_v62 }
 0x1ea   : > { %v883_v57 = vpop.f32.mrb[15].mxu1  ;;  %3431 = vmatpush3.bf16.msra.mxu0 %v3428_v62  ;;  %v2873_v62 = vld [vmem:[%s4291_s3 + $0x90] sm:$0xff] }
 0x1eb   : > { %v3432_v59 = vpack.c.bf16 %v3187_v63, %v883_v57 }
 0x1ed   : > { %3433 = vmatprep.subr.bf16.mxu0 %v3432_v59  ;;  %v3226_v0 = vpop.f32.mrb[16].mxu1 }
 0x1ee   : > { %3435 = vmatpush3.bf16.msra.mxu0 %v3432_v59  ;;  %v1162_v1 = vpop.f32.mrb[17].mxu1  ;;  %v2874_v59 = vld [vmem:[%s4291_s3 + $0x98] sm:$0xff] }
 0x1ef   : > { %v3452_v3 = vpack.c.bf16 %v3226_v0, %v1162_v1  ;;  %3437 = vmatprep.subr.bf16.mxu0 %v3436_v56  ;;  %v2887_v1 = vld [vmem:[%s4291_s3 + $0xa0] sm:$0xff] }
 0x1f1   : > { %3197 = vmatmul.mubr.msk.f32.vlgmr.msra.gmra.mrb[8].mxu0 %vm700_vm0, %v2820_v2  ;;  %v3229_v5 = vpop.f32.mrb[18].mxu1 }
 0x1f2   : > { %3439 = vmatpush3.bf16.msra.mxu0 %v3436_v56  ;;  %v1172_v6 = vpop.f32.mrb[19].mxu1  ;;  %3199 = vmatprep.mubr.msk.f32.mxu0 %vm700_vm0, %v2821_v4  ;;  %v2888_v4 = vld [vmem:[%s4291_s3 + $0xa8] sm:$0xff] }
 0x1f3   : > { %v3456_v8 = vpack.c.bf16 %v3229_v5, %v1172_v6  ;;  %3441 = vmatprep.subr.bf16.mxu0 %v3440_v60  ;;  %v2889_v6 = vld [vmem:[%s4291_s3 + $0xb0] sm:$0xff] }
 0x1f5   : > { %3200 = vmatmul.mubr.msk.f32.gmra.mrb[10].mxu0 %vm700_vm0, %v2822_v7  ;;  %v3254_v10 = vpop.f32.mrb[20].mxu1 }
 0x1f6   : > { %3443 = vmatpush3.bf16.msra.mxu0 %v3440_v60  ;;  %v1358_v11 = vpop.f32.mrb[21].mxu1  ;;  %3210 = vmatprep.mubr.msk.f32.mxu0 %vm700_vm0, %v798_v9  ;;  %v2890_v9 = vld [vmem:[%s4291_s3 + $0xb8] sm:$0xff] }
 0x1f7   : > { %v3468_v13 = vpack.c.bf16 %v3254_v10, %v1358_v11  ;;  %3453 = vmatprep.subr.bf16.mxu0 %v3452_v3  ;;  %v2903_v11 = vld [vmem:[%s4291_s3 + $0xc0] sm:$0xff] }
 0x1f9   : > { %3211 = vmatmul.mubr.msk.f32.vlgmr.msra.gmra.mrb[8].mxu0 %vm700_vm0, %v799_v12  ;;  %v3257_v15 = vpop.f32.mrb[22].mxu1 }
 0x1fa   : > { %3455 = vmatpush3.bf16.msra.mxu0 %v3452_v3  ;;  %v1368_v16 = vpop.f32.mrb[23].mxu1  ;;  %3213 = vmatprep.mubr.msk.f32.mxu0 %vm700_vm0, %v800_v14  ;;  %v2904_v14 = vld [vmem:[%s4291_s3 + $0xc8] sm:$0xff] }
 0x1fb   : > { %v3472_v18 = vpack.c.bf16 %v3257_v15, %v1368_v16  ;;  %3457 = vmatprep.subr.bf16.mxu0 %v3456_v8  ;;  %v2905_v16 = vld [vmem:[%s4291_s3 + $0xd0] sm:$0xff] }
 0x1fd   : > { %3214 = vmatmul.mubr.msk.f32.gmra.mrb[10].mxu0 %vm700_vm0, %v801_v17  ;;  %v3282_v21 = vpop.f32.mrb[24].mxu1 }
 0x1fe   : > { %3459 = vmatpush3.bf16.msra.mxu0 %v3456_v8  ;;  %v1554_v22 = vpop.f32.mrb[25].mxu1  ;;  %3238 = vmatprep.mubr.msk.f32.mxu0 %vm700_vm0, %v2839_v20  ;;  %v2906_v20 = vld [vmem:[%s4291_s3 + $0xd8] sm:$0xff] }
 0x1ff   : > { %v3484_v25 = vpack.c.bf16 %v3282_v21, %v1554_v22  ;;  %3469 = vmatprep.subr.bf16.mxu0 %v3468_v13  ;;  %v2919_v22 = vld [vmem:[%s4291_s3 + $0xe0] sm:$0xff] }
 0x201   : > { %3239 = vmatmul.mubr.msk.f32.vlgmr.msra.gmra.mrb[8].mxu0 %vm700_vm0, %v2840_v23  ;;  %v3285_v27 = vpop.f32.mrb[26].mxu1  ;;  %v2920_v23 = vld [vmem:[%s4291_s3 + $0xe8] sm:$0xff] }
 0x202   : > { %3471 = vmatpush3.bf16.msra.mxu0 %v3468_v13  ;;  %v1564_v28 = vpop.f32.mrb[27].mxu1  ;;  %3241 = vmatprep.mubr.msk.f32.mxu0 %vm700_vm0, %v2841_v26  ;;  %v2922_v26 = vld [vmem:[%s4291_s3 + $0xf8] sm:$0xff] }
 0x203   : > { %v3488_v30 = vpack.c.bf16 %v3285_v27, %v1564_v28  ;;  %3473 = vmatprep.subr.bf16.mxu0 %v3472_v18  ;;  %v2935_v27 = vld [vmem:[%s4291_s3 + $0x100] sm:$0xff]  ;;  %v2936_v28 = vld [vmem:[%s4291_s3 + $0x108] sm:$0xff] }
 0x205   : > { %3242 = vmatmul.mubr.msk.f32.gmra.mrb[10].mxu0 %vm700_vm0, %v2842_v29  ;;  %v3310_v35 = vpop.f32.mrb[28].mxu1  ;;  %v2937_v29 = vld [vmem:[%s4291_s3 + $0x110] sm:$0xff] }
 0x206   : > { %3475 = vmatpush3.bf16.msra.mxu0 %v3472_v18  ;;  %v1750_v39 = vpop.f32.mrb[29].mxu1  ;;  %3266 = vmatprep.mubr.msk.f32.mxu0 %vm700_vm0, %v2855_v31  ;;  %v3631_v31 = vld [vmem:[%s4294_s6 + $0x4] ss:$16 sps:$4 sm:$0xff]  }
 0x207   : > { %v3500_v44 = vpack.c.bf16 %v3310_v35, %v1750_v39  ;;  %3485 = vmatprep.subr.bf16.mxu0 %v3484_v25  ;;  %v3634_v35 = vld [vmem:[%s4294_s6 + $0xc] ss:$16 sps:$4 sm:$0xff]   ;;  %v3629_v39 = vld [vmem:[%s4294_s6] ss:$16 sps:$4 sm:$0xff]   ;;  %2556 = vmatprep.subr.bf16.mxu1 %v3631_v31 }
 0x208   : > { %2557 = vmatpush1.bf16.msra.mxu1 %v3629_v39 }
 0x209   : > { %3267 = vmatmul.mubr.msk.f32.vlgmr.msra.gmra.mrb[8].mxu0 %vm700_vm0, %v2856_v40  ;;  %v3313_v49 = vpop.f32.mrb[30].mxu1  ;;  %v3632_v40 = vld [vmem:[%s4294_s6 + $0x8] ss:$16 sps:$4 sm:$0xff]  }
 0x20a   : > { %3487 = vmatpush3.bf16.msra.mxu0 %v3484_v25  ;;  %v1760_v54 = vpop.f32.mrb[31].mxu1  ;;  %3269 = vmatprep.mubr.msk.f32.mxu0 %vm700_vm0, %v2857_v48  ;;  %v2921_v25 = vld [vmem:[%s4291_s3 + $0xf0] sm:$0xff]  ;;  %v3640_v48 = vld [vmem:[%s4294_s6 + $0x2c] ss:$16 sps:$4 sm:$0xff]  }
 0x20b   : > { %v3504_v56 = vpack.c.bf16 %v3313_v49, %v1760_v54  ;;  %3489 = vmatprep.subr.bf16.mxu0 %v3488_v30  ;;  %v3635_v49 = vld [vmem:[%s4294_s6 + $0x20] ss:$16 sps:$4 sm:$0xff]   ;;  %v3638_v54 = vld [vmem:[%s4294_s6 + $0x28] ss:$16 sps:$4 sm:$0xff]  }
 0x20d   : > { %3270 = vmatmul.mubr.msk.f32.gmra.mrb[10].mxu0 %vm700_vm0, %v2858_v55  ;;  %v3338_v19 = vpop.f32.mrb[32].mxu1  ;;  %v3649_v55 = vmov 0  }
 0x20e   : > { %3491 = vmatpush3.bf16.msra.mxu0 %v3488_v30  ;;  %v1946_v60 = vpop.f32.mrb[33].mxu1  ;;  %3294 = vmatprep.mubr.msk.f32.mxu0 %vm700_vm0, %v2871_v58  ;;  %v2938_v30 = vld [vmem:[%s4291_s3 + $0x118] sm:$0xff] }
 0x20f   : > { %v3516_v24 = vpack.c.bf16 %v3338_v19, %v1946_v60  ;;  %3501 = vmatprep.subr.bf16.mxu0 %v3500_v44  ;;  %2588 = vmatprep.mubr.bf16.mxu1 %v3649_v55 }
 0x211   : > { %3295 = vmatmul.mubr.msk.f32.vlgmr.msra.gmra.mrb[8].mxu0 %vm700_vm0, %v2872_v61  ;;  %v3341_v63 = vpop.f32.mrb[34].mxu1 }
 0x212   : > { %3503 = vmatpush3.bf16.msra.mxu0 %v3500_v44  ;;  %v1956_v57 = vpop.f32.mrb[35].mxu1  ;;  %3297 = vmatprep.mubr.msk.f32.mxu0 %vm700_vm0, %v2873_v62  ;;  %v3637_v44 = vld [vmem:[%s4294_s6 + $0x24] ss:$16 sps:$4 sm:$0xff]  }
 0x213   : > { %v3520_v0 = vpack.c.bf16 %v3341_v63, %v1956_v57  ;;  %3505 = vmatprep.subr.bf16.mxu0 %v3504_v56  ;;  %2558 = vmatprep.subr.bf16.mxu1 %v3637_v44 }
 0x214   : > { %2559 = vmatpush1.bf16.msra.mxu1 %v3635_v49 }
 0x215   : > { %3298 = vmatmul.mubr.msk.f32.gmra.mrb[10].mxu0 %vm700_vm0, %v2874_v59  ;;  %v3366_v2 = vpop.f32.mrb[36].mxu1 }
 0x216   : > { %3507 = vmatpush3.bf16.msra.mxu0 %v3504_v56  ;;  %v2142_v3 = vpop.f32.mrb[37].mxu1  ;;  %3322 = vmatprep.mubr.msk.f32.mxu0 %vm700_vm0, %v2887_v1  ;;  %v2943_v56 = vld [vmem:[%s4293_s5] ss:$0 sm:$0xff] }
 0x217   : > { %v3532_v5 = vpack.c.bf16 %v3366_v2, %v2142_v3  ;;  %3517 = vmatprep.subr.bf16.mxu0 %v3516_v24 }
 0x219   : > { %3323 = vmatmul.mubr.msk.f32.vlgmr.msra.gmra.mrb[8].mxu0 %vm700_vm0, %v2888_v4  ;;  %v3369_v7 = vpop.f32.mrb[38].mxu1 }
 0x21a   : > { %3519 = vmatpush3.bf16.msra.mxu0 %v3516_v24  ;;  %v2152_v8 = vpop.f32.mrb[39].mxu1  ;;  %3325 = vmatprep.mubr.msk.f32.mxu0 %vm700_vm0, %v2889_v6 }
 0x21b   : > { %v3536_v10 = vpack.c.bf16 %v3369_v7, %v2152_v8  ;;  %3521 = vmatprep.subr.bf16.mxu0 %v3520_v0 }
 0x21d   : > { %3326 = vmatmul.mubr.msk.f32.gmra.mrb[10].mxu0 %vm700_vm0, %v2890_v9  ;;  %v3394_v12 = vpop.f32.mrb[40].mxu1  ;;  %v2488_v9 = vld [vmem:[%s4295_s7] sm:$0xf] }
 0x21e   : > { %3523 = vmatpush3.bf16.msra.mxu0 %v3520_v0  ;;  %v2338_v13 = vpop.f32.mrb[41].mxu1  ;;  %3350 = vmatprep.mubr.msk.f32.mxu0 %vm700_vm0, %v2903_v11 }
 0x21f   : > { %v3548_v15 = vpack.c.bf16 %v3394_v12, %v2338_v13  ;;  %3533 = vmatprep.subr.bf16.mxu0 %v3532_v5 }
 0x221   : > { %3351 = vmatmul.mubr.msk.f32.vlgmr.msra.gmra.mrb[8].mxu0 %vm700_vm0, %v2904_v14  ;;  %v3397_v17 = vpop.f32.mrb[42].mxu1 }
 0x222   : > { %3535 = vmatpush3.bf16.msra.mxu0 %v3532_v5  ;;  %v2348_v18 = vpop.f32.mrb[43].mxu1  ;;  %3353 = vmatprep.mubr.msk.f32.mxu0 %vm700_vm0, %v2905_v16  ;;  %v2490_v5 = vlaneseq }
 0x223   : > { %v3552_v21 = vpack.c.bf16 %v3397_v17, %v2348_v18  ;;  %3537 = vmatprep.subr.bf16.mxu0 %v3536_v10 }
 0x224   : > { %v2491_v6 = vshrl.u32 %v2490_v5, 7 }
 0x225   : > { %3354 = vmatmul.mubr.msk.f32.gmra.mrb[10].mxu0 %vm700_vm0, %v2906_v20 }
 0x226   : > { %3539 = vmatpush3.bf16.msra.mxu0 %v3536_v10  ;;  %3378 = vmatprep.mubr.msk.f32.mxu0 %vm700_vm0, %v2919_v22  ;;  %v2492_v7 = vsub.s32 0, %v2491_v6  ;;  %v2500_v8 = vsub.s32 2, %v2491_v6  ;;  %v2496_v10 = vsub.s32 1, %v2491_v6  ;;  %v2504_v11 = vsub.s32 3, %v2491_v6 }
 0x227   : > { %3549 = vmatprep.subr.bf16.mxu0 %v3548_v15 }
 0x228   : > { %v2493_v12 = vrot.slane %v2488_v9, %v2492_v7  ;;  %v2501_v13 = vrot.slane %v2488_v9, %v2500_v8  ;;  %v2497_v14 = vrot.slane %v2488_v9, %v2496_v10 }
 0x229   : > { %3379 = vmatmul.mubr.msk.f32.vlgmr.msra.gmra.mrb[8].mxu0 %vm700_vm0, %v2920_v23 }
 0x22a   : > { %3551 = vmatpush3.bf16.msra.mxu0 %v3548_v15  ;;  %3381 = vmatprep.mubr.msk.f32.mxu0 %vm700_vm0, %v2921_v25  ;;  %v2505_v15 = vrot.slane %v2488_v9, %v2504_v11 }
 0x22b   : > { %3553 = vmatprep.subr.bf16.mxu0 %v3552_v21 }
 0x22d   : > { %3382 = vmatmul.mubr.msk.f32.gmra.mrb[10].mxu0 %vm700_vm0, %v2922_v26 }
 0x22e   : > { %3555 = vmatpush3.bf16.msra.mxu0 %v3552_v21  ;;  %3406 = vmatprep.mubr.msk.f32.mxu0 %vm700_vm0, %v2935_v27 }
 0x22f   : > { %2609 = vmatprep.subr.bf16.mxu0 %v3634_v35 }
 0x231   : > { %3407 = vmatmul.mubr.msk.f32.vlgmr.msra.gmra.mrb[8].mxu0 %vm700_vm0, %v2936_v28 }
 0x232   : > { %3409 = vmatprep.mubr.msk.f32.mxu0 %vm700_vm0, %v2937_v29  ;;  %2610 = vmatpush1.bf16.msra.mxu0 %v3632_v40 }
 0x233   : > { %2611 = vmatprep.subr.bf16.mxu0 %v3640_v48 }
 0x235   : > { %3410 = vmatmul.mubr.msk.f32.gmra.mrb[10].mxu0 %vm700_vm0, %v2938_v30 }
 0x236   : > { %2612 = vmatpush1.bf16.msra.mxu0 %v3638_v54  ;;  %2641 = vmatprep.mubr.bf16.mxu0 %v3649_v55 }
 0x304   : > { %v3408_v58 = vpop.f32.mrb[8].mxu0 }
 0x305   : > { %v2471_v19 = vadd.f32 %v3408_v58, %v2943_v56  ;;  %v2440_v60 = vpop.f32.mrb[9].mxu0 }
 0x306   : > { %v2470_v61 = vadd.f32 %v2943_v56, %v2440_v60 }
 0x307   : > { %v2475_v24 = vmax.f32 %v2471_v19, 0.0 }
 0x308   : > { %v2474_v62 = vmax.f32 %v2470_v61, 0.0  ;;  %v3411_v63 = vpop.f32.mrb[10].mxu0 }
 0x309   : > { %v2473_v57 = vadd.f32 %v3411_v63, %v2943_v56  ;;  %v2450_v59 = vpop.f32.mrb[11].mxu0 }
 0x30a   : > { %v2478_v0 = vpack.c.bf16 %v2475_v24, %v2474_v62  ;;  %v2472_v1 = vadd.f32 %v2943_v56, %v2450_v59 }
 0x30b   : > { %v2477_v2 = vmax.f32 %v2473_v57, 0.0 }
 0x30c   : > { %v2476_v3 = vmax.f32 %v2472_v1, 0.0  ;;  %2952 = vmatmul.mubr.msk.bf16.vlgmr.msra.gmra.mrb[44].mxu1 %vm700_vm0, %v2478_v0  ;;  %2954 = vmatmul.mubr.msk.bf16.vlgmr.msra.gmra.mrb[12].mxu0 %vm700_vm0, %v2478_v0 }
 0x30d   : > { %2598 = vmatprep.mubr.bf16.mxu1 %v3649_v55  ;;  %2651 = vmatprep.mubr.bf16.mxu0 %v3649_v55 }
 0x30e   : > { %v2479_v4 = vpack.c.bf16 %v2477_v2, %v2476_v3 }
 0x314   : > { %2953 = vmatmul.mubr.msk.bf16.gmra.mrb[48].mxu1 %vm700_vm0, %v2479_v4  ;;  %2955 = vmatmul.mubr.msk.bf16.gmra.mrb[16].mxu0 %vm700_vm0, %v2479_v4 }
 0x3df   : > { %v2590_v16 = vpop.f32.mrb[44].mxu1  ;;  %v2643_v17 = vpop.f32.mrb[12].mxu0 }
 0x3e0   : > { %v2591_v18 = vadd.f32 %v2590_v16, %v2493_v12  ;;  %v2644_v20 = vadd.f32 %v2643_v17, %v2501_v13  ;;  %v2592_v21 = vpop.f32.mrb[45].mxu1  ;;  %v2645_v22 = vpop.f32.mrb[13].mxu0 }
 0x3e1   : > { %v2593_v23 = vadd.f32 %v2592_v21, %v2497_v14  ;;  %v2646_v25 = vadd.f32 %v2645_v22, %v2505_v15  ;;  %v2594_v26 = vpop.f32.mrb[46].mxu1  ;;  %v2647_v27 = vpop.f32.mrb[14].mxu0 }
 0x3e2   : > { %v2662_v28 = vadd.f32 %v2591_v18, %v3828_v37  ;;  %v2664_v29 = vadd.f32 %v2644_v20, %v3838_v41  ;;  %v2595_v30 = vadd.f32 %v2594_v26, %v2493_v12  ;;  %v2648_v31 = vadd.f32 %v2647_v27, %v2501_v13  ;;  %v2596_v35 = vpop.f32.mrb[47].mxu1  ;;  %v2649_v39 = vpop.f32.mrb[15].mxu0 }
 0x3e3   : > { %v2663_v40 = vadd.f32 %v2593_v23, %v3814_v32  ;;  %v2665_v44 = vadd.f32 %v2646_v25, %v3820_v34  ;;  %v2597_v37 = vadd.f32 %v2596_v35, %v2497_v14  ;;  %v2650_v41 = vadd.f32 %v2649_v39, %v2505_v15 }
 0x3e4   : > { %v2678_v48 = vmax.f32 %v2662_v28, 0.0  ;;  %v2680_v49 = vmax.f32 %v2664_v29, 0.0  ;;  %v2666_v54 = vadd.f32 %v2595_v30, %v3831_v38  ;;  %v2668_v55 = vadd.f32 %v2648_v31, %v3841_v42 }
 0x3e5   : > { %v2679_v56 = vmax.f32 %v2663_v40, 0.0  ;;  %v2681_v58 = vmax.f32 %v2665_v44, 0.0  ;;  %v2667_v19 = vadd.f32 %v2597_v37, %v3817_v33  ;;  %v2669_v32 = vadd.f32 %v2650_v41, %v3825_v36 }
 0x3e6   : > { %2694 = vst [vmem:[%s4253_s12] sm:$0xff] %v2678_v48  ;;  %2696 = vst [vmem:[%s4253_s12 + $0x10] sm:$0xff] %v2680_v49  ;;  %v2682_v34 = vmax.f32 %v2666_v54, 0.0  ;;  %v2684_v60 = vmax.f32 %v2668_v55, 0.0 }
 0x3e7   : > { %2695 = vst [vmem:[%s4253_s12 + $0x8] sm:$0xff] %v2679_v56  ;;  %2697 = vst [vmem:[%s4253_s12 + $0x18] sm:$0xff] %v2681_v58  ;;  %v2683_v61 = vmax.f32 %v2667_v19, 0.0  ;;  %v2685_v38 = vmax.f32 %v2669_v32, 0.0  ;;  %v2600_v24 = vpop.f32.mrb[48].mxu1  ;;  %v2653_v62 = vpop.f32.mrb[16].mxu0 }
 0x3e8   : > { %2698 = vst [vmem:[%s4253_s12 + $0x20] sm:$0xff] %v2682_v34  ;;  %2700 = vst [vmem:[%s4253_s12 + $0x30] sm:$0xff] %v2684_v60  ;;  %v2601_v42 = vadd.f32 %v2600_v24, %v2493_v12  ;;  %v2654_v63 = vadd.f32 %v2653_v62, %v2501_v13  ;;  %v2602_v57 = vpop.f32.mrb[49].mxu1  ;;  %v2655_v33 = vpop.f32.mrb[17].mxu0 }
 0x3e9   : > { %2699 = vst [vmem:[%s4253_s12 + $0x28] sm:$0xff] %v2683_v61  ;;  %2701 = vst [vmem:[%s4253_s12 + $0x38] sm:$0xff] %v2685_v38  ;;  %v2603_v36 = vadd.f32 %v2602_v57, %v2497_v14  ;;  %v2656_v59 = vadd.f32 %v2655_v33, %v2505_v15  ;;  %v2604_v0 = vpop.f32.mrb[50].mxu1  ;;  %v2657_v1 = vpop.f32.mrb[18].mxu0 }
 0x3ea   : > { %v2670_v2 = vadd.f32 %v2601_v42, %v3862_v50  ;;  %v2672_v3 = vadd.f32 %v2654_v63, %v3868_v52  ;;  %v2605_v4 = vadd.f32 %v2604_v0, %v2493_v12  ;;  %v2658_v5 = vadd.f32 %v2657_v1, %v2501_v13  ;;  %v2606_v6 = vpop.f32.mrb[51].mxu1  ;;  %v2659_v7 = vpop.f32.mrb[19].mxu0 }
 0x3eb   : > { %v2671_v8 = vadd.f32 %v2603_v36, %v3844_v43  ;;  %v2673_v9 = vadd.f32 %v2656_v59, %v3852_v46  ;;  %v2607_v10 = vadd.f32 %v2606_v6, %v2497_v14  ;;  %v2660_v11 = vadd.f32 %v2659_v7, %v2505_v15 }
 0x3ec   : > { %v2686_v16 = vmax.f32 %v2670_v2, 0.0  ;;  %v2688_v17 = vmax.f32 %v2672_v3, 0.0  ;;  %v2674_v50 = vadd.f32 %v2605_v4, %v3865_v51  ;;  %v2676_v52 = vadd.f32 %v2658_v5, %v3871_v53 }
 0x3ed   : > { %v2687_v12 = vmax.f32 %v2671_v8, 0.0  ;;  %v2689_v13 = vmax.f32 %v2673_v9, 0.0  ;;  %v2675_v43 = vadd.f32 %v2607_v10, %v3849_v45  ;;  %v2677_v18 = vadd.f32 %v2660_v11, %v3855_v47 }
 0x3ee   : > { %2702 = vst [vmem:[%s4253_s12 + $0x40] sm:$0xff] %v2686_v16  ;;  %2704 = vst [vmem:[%s4253_s12 + $0x50] sm:$0xff] %v2688_v17  ;;  %v2690_v46 = vmax.f32 %v2674_v50, 0.0  ;;  %v2692_v14 = vmax.f32 %v2676_v52, 0.0 }
 0x3ef   : > { %2703 = vst [vmem:[%s4253_s12 + $0x48] sm:$0xff] %v2687_v12  ;;  %2705 = vst [vmem:[%s4253_s12 + $0x58] sm:$0xff] %v2689_v13  ;;  %v2691_v15 = vmax.f32 %v2675_v43, 0.0  ;;  %v2693_v20 = vmax.f32 %v2677_v18, 0.0 }
 0x3f0   : > { %2706 = vst [vmem:[%s4253_s12 + $0x60] sm:$0xff] %v2690_v46  ;;  %2708 = vst [vmem:[%s4253_s12 + $0x70] sm:$0xff] %v2692_v14 }
 0x3f1   : > { %2707 = vst [vmem:[%s4253_s12 + $0x68] sm:$0xff] %v2691_v15  ;;  %2709 = vst [vmem:[%s4253_s12 + $0x78] sm:$0xff] %v2693_v20 }
 0x3f2 PF: > { %s18_s27 = sadd.s32 1, %s3647_s27  }
 0x3f3   : > { %p15_p4 = scmp.ge.s32.totalorder %s18_s27, 4  }
 0x3f5   :  { %17 = sbr.rel (!%p15_p4) target bundleno = 1 (0x1), region = 98 }

</bundles_post_ra>
